<compile_context>
chip_gen: v6e
topology: v6e:2x2x1
jax: 0.10.0
libtpu: 0.0.40
codegen_flags: <defaults>
</compile_context>

<pallas_src>
import functools

import jax
import jax.numpy as jnp
from jax.experimental import pallas as pl
from jax.experimental.pallas import tpu as pltpu

EPS = 1e-12  # torch.nn.functional.normalize default eps


def addnoise_kernel(x_ref, n_ref, o_ref, *, mean, stddev):
    # x_ref / n_ref / o_ref: (2, C_t, H, W_t) f32 blocks in VMEM.
    # n_ref holds standard-normal draws; mean/std fused here (one FMA each).
    pose = x_ref[0] + (mean + stddev * n_ref[0])
    head = x_ref[1] + (mean + stddev * n_ref[1])

    # F.normalize(head, dim=1): L2 norm over the H axis (sublane reduction).
    sq = jnp.sum(head * head, axis=1, keepdims=True)            # (C_t, 1, W_t)
    # 1/max(||.||, eps) == rsqrt(max(||.||^2, eps^2)) -> EUP rsqrt, no divide.
    inv_norm = jax.lax.rsqrt(jnp.maximum(sq, EPS * EPS))

    o_ref[0] = pose
    o_ref[1] = head * inv_norm


def _pick_w_tile(W):
    """Lane-dim tile: multiple of 128 when possible, else the full (small) W."""
    if W % 128 == 0:
        for cand in (512, 256, 128):
            if W % cand == 0:
                return cand
    return W                                  # full-dim block is always legal


def _pick_c_tile(C, H, w_t, budget_bytes=2 * 1024 * 1024):
    """Largest divisor of C keeping a (2, C_t, H, W_t) f32 block under budget."""
    per_c_bytes = 2 * H * w_t * 4
    best = 1
    for c_t in range(1, C + 1):
        if C % c_t == 0 and c_t * per_c_bytes <= budget_bytes:
            best = c_t
    return best


def add_noise(x, seed, *, mean=0.0, stddev=1.0):
    """x: (2, C, H, W). Returns float32 (2, C, H, W)."""
    x = jnp.asarray(x, jnp.float32)
    assert x.ndim == 4 and x.shape[0] == 2, x.shape
    _, C, H, W = x.shape

    # Standard-normal noise generated once in the wrapper (portable across
    # TPU hardware and interpret mode); mean/std are applied inside the kernel.
    if stddev != 0.0:
        key = jax.random.PRNGKey(int(seed))
        noise = jax.random.normal(key, x.shape, dtype=jnp.float32)
    else:
        noise = jnp.zeros(x.shape, dtype=jnp.float32)

    w_t = _pick_w_tile(W)
    c_t = _pick_c_tile(C, H, w_t)
    grid = (C // c_t, W // w_t)
    block = (2, c_t, H, w_t)                  # H whole: reduction axis per tile
    spec = pl.BlockSpec(block, lambda ci, wi: (0, ci, 0, wi))

    kernel = functools.partial(addnoise_kernel, mean=float(mean), stddev=float(stddev))

    return pl.pallas_call(
        kernel,
        out_shape=jax.ShapeDtypeStruct(x.shape, jnp.float32),
        grid=grid,
        in_specs=[spec, spec],
        out_specs=spec,
        compiler_params=pltpu.CompilerParams(
            # Both axes independent -> shard across v7x's 2 TensorCores.
            dimension_semantics=("parallel", "parallel"),
        ),
    )(x, noise)


class AddNoise:
    """JAX/Pallas counterpart of the PyTorch AddNoise module."""

    def __init__(self, mean=0.0, stddev=1.0):
        self.mean = float(mean)
        self.stddev = float(stddev)

    def __call__(self, x, seed=0):
        return add_noise(x, seed, mean=self.mean, stddev=self.stddev)


if __name__ == "__main__":
    key = jax.random.PRNGKey(0)
    C, H, W = 4, 16, 16
    x = jax.random.normal(key, (2, C, H, W), dtype=jnp.float32)

    # --- 1) Deterministic path (stddev=0): exact comparison vs pure-JAX ref ---
    mean0 = 0.25
    det = AddNoise(mean=mean0, stddev=0.0)(x, seed=7)
    det = jax.block_until_ready(det)
    ref_pose = x[0] + mean0
    head = x[1] + mean0
    ref_head = head * jax.lax.rsqrt(
        jnp.maximum(jnp.sum(head * head, axis=1, keepdims=True), EPS * EPS)
    )
    ref = jnp.stack([ref_pose, ref_head], axis=0)
    assert det.shape == (2, C, H, W)
    assert jnp.allclose(det, ref, atol=1e-5, rtol=1e-5)

    # --- 2) Stochastic path: shape / normalization / noise statistics ---------
    out = AddNoise(mean=0.0, stddev=1.0)(x, seed=1234)
    out = jax.block_until_ready(out)
    assert out.shape == (2, C, H, W)
    assert bool(jnp.all(jnp.isfinite(out)))
    # head slice must be unit-norm along H after normalization
    col_norm = jnp.sqrt(jnp.sum(out[1] * out[1], axis=1))
    assert jnp.allclose(col_norm, 1.0, atol=1e-4)
    # pose noise should look ~N(0, 1) over 1024 samples
    noise = out[0] - x[0]
    assert abs(float(jnp.mean(noise))) < 0.2
    assert abs(float(jnp.std(noise)) - 1.0) < 0.2
    # stochastic path must also match a pure-JAX reference exactly
    key_n = jax.random.PRNGKey(1234)
    n_ref = jax.random.normal(key_n, x.shape, dtype=jnp.float32)
    rp = x[0] + n_ref[0]
    rh = x[1] + n_ref[1]
    rh = rh * jax.lax.rsqrt(
        jnp.maximum(jnp.sum(rh * rh, axis=1, keepdims=True), EPS * EPS)
    )
    assert jnp.allclose(out, jnp.stack([rp, rh], axis=0), atol=1e-5, rtol=1e-5)

    print("KERNEL_OK")
</pallas_src>

<mosaic_0001>
module attributes {stable_mosaic.version = 11 : i64} {
  func.func @addnoise_kernel(%arg0: i32, %arg1: i32, %arg2: memref<2x4x16x16xf32, #tpu.memory_space<vmem>>, %arg3: memref<2x4x16x16xf32, #tpu.memory_space<vmem>>, %arg4: memref<2x4x16x16xf32, #tpu.memory_space<vmem>>) attributes {dimension_semantics = [#tpu.dimension_semantics<parallel>, #tpu.dimension_semantics<parallel>], iteration_bounds = array<i64: 1, 1>, scalar_prefetch = 0 : i64, scratch_operands = 0 : i64, tpu.core_type = #tpu.core_type<tc>, window_params = [{transform_indices = @transform_0, window_bounds = array<i64: 2, 4, 16, 16>}, {transform_indices = @transform_1, window_bounds = array<i64: 2, 4, 16, 16>}, {transform_indices = @transform_2, window_bounds = array<i64: 2, 4, 16, 16>}]} {
    %c0 = arith.constant 0 : index
    %c0_0 = arith.constant 0 : index
    %c0_1 = arith.constant 0 : index
    %c0_2 = arith.constant 0 : index
    %0 = vector.load %arg2[%c0, %c0_0, %c0_1, %c0_2] : memref<2x4x16x16xf32, #tpu.memory_space<vmem>>, vector<1x4x16x16xf32>
    %1 = vector.shape_cast %0 : vector<1x4x16x16xf32> to vector<4x16x16xf32>
    %c0_3 = arith.constant 0 : index
    %c0_4 = arith.constant 0 : index
    %c0_5 = arith.constant 0 : index
    %c0_6 = arith.constant 0 : index
    %2 = vector.load %arg3[%c0_3, %c0_4, %c0_5, %c0_6] : memref<2x4x16x16xf32, #tpu.memory_space<vmem>>, vector<1x4x16x16xf32>
    %3 = vector.shape_cast %2 : vector<1x4x16x16xf32> to vector<4x16x16xf32>
    %cst = arith.constant 0.000000e+00 : f32
    %4 = vector.broadcast %cst : f32 to vector<4x16x16xf32>
    %5 = arith.mulf %4, %3 : vector<4x16x16xf32>
    %cst_7 = arith.constant 2.500000e-01 : f32
    %6 = vector.broadcast %cst_7 : f32 to vector<4x16x16xf32>
    %7 = arith.addf %6, %5 : vector<4x16x16xf32>
    %8 = arith.addf %1, %7 : vector<4x16x16xf32>
    %c1 = arith.constant 1 : index
    %c0_8 = arith.constant 0 : index
    %c0_9 = arith.constant 0 : index
    %c0_10 = arith.constant 0 : index
    %9 = vector.load %arg2[%c1, %c0_8, %c0_9, %c0_10] : memref<2x4x16x16xf32, #tpu.memory_space<vmem>>, vector<1x4x16x16xf32>
    %10 = vector.shape_cast %9 : vector<1x4x16x16xf32> to vector<4x16x16xf32>
    %c1_11 = arith.constant 1 : index
    %c0_12 = arith.constant 0 : index
    %c0_13 = arith.constant 0 : index
    %c0_14 = arith.constant 0 : index
    %11 = vector.load %arg3[%c1_11, %c0_12, %c0_13, %c0_14] : memref<2x4x16x16xf32, #tpu.memory_space<vmem>>, vector<1x4x16x16xf32>
    %12 = vector.shape_cast %11 : vector<1x4x16x16xf32> to vector<4x16x16xf32>
    %cst_15 = arith.constant 0.000000e+00 : f32
    %13 = vector.broadcast %cst_15 : f32 to vector<4x16x16xf32>
    %14 = arith.mulf %13, %12 : vector<4x16x16xf32>
    %cst_16 = arith.constant 2.500000e-01 : f32
    %15 = vector.broadcast %cst_16 : f32 to vector<4x16x16xf32>
    %16 = arith.addf %15, %14 : vector<4x16x16xf32>
    %17 = arith.addf %10, %16 : vector<4x16x16xf32>
    %18 = arith.mulf %17, %17 : vector<4x16x16xf32>
    %cst_17 = arith.constant dense<0.000000e+00> : vector<4x16xf32>
    %19 = vector.multi_reduction <add>, %18, %cst_17 [1] : vector<4x16x16xf32> to vector<4x16xf32>
    %20 = vector.shape_cast %19 : vector<4x16xf32> to vector<4x1x16xf32>
    %cst_18 = arith.constant 1.000000e-24 : f32
    %21 = vector.broadcast %cst_18 : f32 to vector<4x1x16xf32>
    %22 = arith.maximumf %20, %21 : vector<4x1x16xf32>
    %23 = math.rsqrt %22 : vector<4x1x16xf32>
    %c0_19 = arith.constant 0 : index
    %c0_20 = arith.constant 0 : index
    %c0_21 = arith.constant 0 : index
    %c0_22 = arith.constant 0 : index
    %24 = vector.load %arg4[%c0_19, %c0_20, %c0_21, %c0_22] : memref<2x4x16x16xf32, #tpu.memory_space<vmem>>, vector<1x4x16x16xf32>
    %25 = vector.shape_cast %24 : vector<1x4x16x16xf32> to vector<4x16x16xf32>
    %26 = vector.shape_cast %8 : vector<4x16x16xf32> to vector<1x4x16x16xf32>
    tpu.vector_store %arg4[%c0_19, %c0_20, %c0_21, %c0_22], %26 {strides = array<i32>} : memref<2x4x16x16xf32, #tpu.memory_space<vmem>>, vector<1x4x16x16xf32>,
    %27 = vector.broadcast %23 : vector<4x1x16xf32> to vector<4x16x16xf32>
    %28 = arith.mulf %17, %27 : vector<4x16x16xf32>
    %c1_23 = arith.constant 1 : index
    %c0_24 = arith.constant 0 : index
    %c0_25 = arith.constant 0 : index
    %c0_26 = arith.constant 0 : index
    %29 = vector.load %arg4[%c1_23, %c0_24, %c0_25, %c0_26] : memref<2x4x16x16xf32, #tpu.memory_space<vmem>>, vector<1x4x16x16xf32>
    %30 = vector.shape_cast %29 : vector<1x4x16x16xf32> to vector<4x16x16xf32>
    %31 = vector.shape_cast %28 : vector<4x16x16xf32> to vector<1x4x16x16xf32>
    tpu.vector_store %arg4[%c1_23, %c0_24, %c0_25, %c0_26], %31 {strides = array<i32>} : memref<2x4x16x16xf32, #tpu.memory_space<vmem>>, vector<1x4x16x16xf32>,
    return
  }
  func.func @transform_0(%arg0: i32, %arg1: i32) -> (i32, i32, i32, i32) {
    %c0_i32 = arith.constant 0 : i32
    %c0_i32_0 = arith.constant 0 : i32
    %c0_i32_1 = arith.constant 0 : i32
    return %c0_i32, %arg0, %c0_i32_0, %arg1 : i32, i32, i32, i32
  }
  func.func @transform_1(%arg0: i32, %arg1: i32) -> (i32, i32, i32, i32) {
    %c0_i32 = arith.constant 0 : i32
    %c0_i32_0 = arith.constant 0 : i32
    %c0_i32_1 = arith.constant 0 : i32
    return %c0_i32, %arg0, %c0_i32_0, %arg1 : i32, i32, i32, i32
  }
  func.func @transform_2(%arg0: i32, %arg1: i32) -> (i32, i32, i32, i32) {
    %c0_i32 = arith.constant 0 : i32
    %c0_i32_0 = arith.constant 0 : i32
    %c0_i32_1 = arith.constant 0 : i32
    return %c0_i32, %arg0, %c0_i32_0, %arg1 : i32, i32, i32, i32
  }
}

</mosaic_0001>

<bundles_post_ra>
// kernel: tpu_custom_call.1
= control target key start
LH: loop header
LB: loop body
LE: loop exit
PB: predicated region body
PF: predicated region fallthrough
CT: control target
= control target key end

     0   :  { %7 = vsyncpa [#allocation3], 0  ;;  %s394_s0 = inlined_call_operand.hbm [shape: f32[2,4,16,16], index: 0, kind: input, shape index: {}]   ;;  %s395_s1 = inlined_call_operand.hbm [shape: f32[2,4,16,16], index: 1, kind: input, shape index: {}]   ;;  %s396_s2 = inlined_call_operand.hbm [shape: f32[2,4,16,16], index: 2, kind: output, shape index: {}]  }
   0x1   :  { %8 = vsyncpa [#allocation6], 0 }
   0x2   :  { %9 = vsyncpa [#allocation4], 0  ;;  %s297_s9 = smov [#allocation2]  }
   0x3   :  { %s15_s10 = sshll.u32 %s297_s9, 4  ;;  %s16_s10 = int_to_ptr.vmem [resolvable:$true] %s15_s10 }
   0x4   :  { %s239_s11 = scalar_lea.vmem %s16_s10, 2048  ;;  %p244_p1 = scmp.lt.s32.totalorder %s16_s10, %s16_s10 }
   0x5   :  { %p240_p0 = scmp.ne.s32.totalorder %s16_s10, %s239_s11  ;;  %p245_p2 = scmp.lt.s32.totalorder %s239_s11, %s239_s11 }
   0x7   :  { %p246_p3 = por %p245_p2, %p244_p1 }
   0x9   :  { %p247_p4 = pnand %p246_p3, %p240_p0 }
   0xb   :  { %250 = shalt.err (!%p247_p4)
}
   0xc   :  { %s298_s12 = smov 128   ;;  %s299_s13 = smov 8  }
   0xd   :  { %21 = dma.hbm_to_vmem [thread:$0]  %s394_s0, 2048, %s16_s10, [#allocation3], %s298_s12, %s298_s12, %s299_s13  }
   0xe   :  { %s300_s16 = smov [#allocation5]  }
   0xf   :  { %s27_s17 = sshll.u32 %s300_s16, 4  ;;  %s28_s17 = int_to_ptr.vmem [resolvable:$true] %s27_s17 }
  0x10   :  { %s259_s18 = scalar_lea.vmem %s28_s17, 2048  ;;  %p264_p6 = scmp.lt.s32.totalorder %s28_s17, %s28_s17 }
  0x11   :  { %p260_p5 = scmp.ne.s32.totalorder %s28_s17, %s259_s18  ;;  %p265_p7 = scmp.lt.s32.totalorder %s259_s18, %s259_s18 }
  0x13   :  { %p266_p8 = por %p265_p7, %p264_p6 }
  0x15   :  { %p267_p9 = pnand %p266_p8, %p260_p5 }
  0x17   :  { %270 = shalt.err (!%p267_p9)
}
  0x18   :  { %33 = dma.hbm_to_vmem [thread:$0]  %s395_s1, 2048, %s28_s17, [#allocation6], %s298_s12, %s298_s12, %s299_s13  }
  0x19   :  { %291 = dma.done.wait [#allocation3], 2048  }
  0x1a   :  { %292 = vsyncadd [#allocation3], 4294965248 }
  0x1b   :  { %293 = dma.done.wait [#allocation6], 2048  }
  0x1c   :  { %294 = vsyncadd [#allocation6], 4294965248  ;;  %v48_v0 = vld [vmem:[#allocation5] sm:$0xff]  ;;  %v49_v2 = vld [vmem:[#allocation5 + $0x8] sm:$0xff]  ;;  %vm130_vm0 = vcmask 130048   ;;  %s301_s0 = smov [#allocation7]  }
  0x1d   :  { %v56_v1 = vmul.f32 0.0, %v48_v0  ;;  %v50_v3 = vld [vmem:[#allocation5 + $0x10] sm:$0xff]  ;;  %v40_v4 = vld [vmem:[#allocation2] sm:$0xff]  ;;  %v41_v5 = vld [vmem:[#allocation2 + $0x8] sm:$0xff]  ;;  %v57_v6 = vmul.f32 0.0, %v49_v2  ;;  %s205_s1 = sshll.u32 %s301_s0, 4  ;;  %s206_s1 = int_to_ptr.vmem [resolvable:$true] %s205_s1 }
  0x1e   :  { %v58_v7 = vmul.f32 0.0, %v50_v3  ;;  %v51_v8 = vld [vmem:[#allocation5 + $0x18] sm:$0xff]  ;;  %v42_v10 = vld [vmem:[#allocation2 + $0x10] sm:$0xff]  ;;  %v52_v12 = vld [vmem:[#allocation5 + $0x20] sm:$0xff]  ;;  %s271_s21 = scalar_lea.vmem %s206_s1, 2048  ;;  %p276_p11 = scmp.lt.s32.totalorder %s206_s1, %s206_s1 }
  0x1f   :  { %v64_v9 = vadd.f32 0.25, %v56_v1  ;;  %v59_v11 = vmul.f32 0.0, %v51_v8  ;;  %v53_v13 = vld [vmem:[#allocation5 + $0x28] sm:$0xff]  ;;  %v65_v14 = vadd.f32 0.25, %v57_v6  ;;  %v43_v16 = vld [vmem:[#allocation2 + $0x18] sm:$0xff]  ;;  %v60_v17 = vmul.f32 0.0, %v52_v12  ;;  %p272_p10 = scmp.ne.s32.totalorder %s206_s1, %s271_s21  ;;  %p277_p12 = scmp.lt.s32.totalorder %s271_s21, %s271_s21 }
  0x20   :  { %v66_v15 = vadd.f32 0.25, %v58_v7  ;;  %v61_v18 = vmul.f32 0.0, %v53_v13  ;;  %v54_v19 = vld [vmem:[#allocation5 + $0x30] sm:$0xff]  ;;  %v44_v22 = vld [vmem:[#allocation2 + $0x20] sm:$0xff]  ;;  %v45_v23 = vld [vmem:[#allocation2 + $0x28] sm:$0xff] }
  0x21   :  { %v72_v20 = vadd.f32 %v64_v9, %v40_v4  ;;  %v67_v21 = vadd.f32 0.25, %v59_v11  ;;  %v62_v24 = vmul.f32 0.0, %v54_v19  ;;  %v55_v25 = vld [vmem:[#allocation5 + $0x38] sm:$0xff]  ;;  %v73_v26 = vadd.f32 %v65_v14, %v41_v5  ;;  %v46_v30 = vld [vmem:[#allocation2 + $0x30] sm:$0xff]  ;;  %v90_v31 = vld [vmem:[#allocation5 + $0x40] sm:$0xff]  ;;  %p278_p13 = por %p277_p12, %p276_p11 }
  0x22   :  { %v74_v27 = vadd.f32 %v66_v15, %v42_v10  ;;  %v68_v28 = vadd.f32 0.25, %v60_v17  ;;  %v69_v29 = vadd.f32 0.25, %v61_v18  ;;  %v91_v32 = vld [vmem:[#allocation5 + $0x48] sm:$0xff]  ;;  %v47_v35 = vld [vmem:[#allocation2 + $0x38] sm:$0xff]  ;;  %v63_v36 = vmul.f32 0.0, %v55_v25  ;;  %v92_v38 = vld [vmem:[#allocation5 + $0x50] sm:$0xff] }
  0x23   :  { %175 = vst.msk [vmem:[#allocation7] sm:$0xff] %vm130_vm0, %v72_v20  ;;  %v75_v33 = vadd.f32 %v67_v21, %v43_v16  ;;  %v70_v34 = vadd.f32 0.25, %v62_v24  ;;  %v98_v37 = vmul.f32 0.0, %v90_v31  ;;  %176 = vst.msk [vmem:[#allocation7 + $0x8] sm:$0xff] %vm130_vm0, %v73_v26  ;;  %v81_v41 = vld [vmem:[#allocation2 + $0x40] sm:$0xff]  ;;  %v82_v42 = vld [vmem:[#allocation2 + $0x48] sm:$0xff]  ;;  %p279_p0 = pnand %p278_p13, %p272_p10 }
  0x24   :  { %177 = vst.msk [vmem:[#allocation7 + $0x10] sm:$0xff] %vm130_vm0, %v74_v27  ;;  %v76_v39 = vadd.f32 %v68_v28, %v44_v22  ;;  %v77_v40 = vadd.f32 %v69_v29, %v45_v23  ;;  %v99_v43 = vmul.f32 0.0, %v91_v32  ;;  %v93_v44 = vld [vmem:[#allocation5 + $0x58] sm:$0xff]  ;;  %v100_v45 = vmul.f32 0.0, %v92_v38  ;;  %v83_v49 = vld [vmem:[#allocation2 + $0x50] sm:$0xff]  ;;  %v94_v51 = vld [vmem:[#allocation5 + $0x60] sm:$0xff] }
  0x25   :  { %178 = vst.msk [vmem:[#allocation7 + $0x18] sm:$0xff] %vm130_vm0, %v75_v33  ;;  %v78_v46 = vadd.f32 %v70_v34, %v46_v30  ;;  %v71_v47 = vadd.f32 0.25, %v63_v36  ;;  %v106_v48 = vadd.f32 0.25, %v98_v37  ;;  %v101_v50 = vmul.f32 0.0, %v93_v44  ;;  %v95_v52 = vld [vmem:[#allocation5 + $0x68] sm:$0xff]  ;;  %v84_v54 = vld [vmem:[#allocation2 + $0x58] sm:$0xff] }
  0x26   :  { %179 = vst.msk [vmem:[#allocation7 + $0x20] sm:$0xff] %vm130_vm0, %v76_v39  ;;  %180 = vst.msk [vmem:[#allocation7 + $0x28] sm:$0xff] %vm130_vm0, %v77_v40  ;;  %v107_v53 = vadd.f32 0.25, %v99_v43  ;;  %v108_v55 = vadd.f32 0.25, %v100_v45  ;;  %v102_v56 = vmul.f32 0.0, %v94_v51  ;;  %v103_v57 = vmul.f32 0.0, %v95_v52 }
  0x27   :  { %v96_v58 = vld [vmem:[#allocation5 + $0x70] sm:$0xff]  ;;  %181 = vst.msk [vmem:[#allocation7 + $0x30] sm:$0xff] %vm130_vm0, %v78_v46  ;;  %v79_v59 = vadd.f32 %v71_v47, %v47_v35  ;;  %v336_v60 = vadd.f32 %v106_v48, %v81_v41  ;;  %v109_v61 = vadd.f32 0.25, %v101_v50  ;;  %v85_v62 = vld [vmem:[#allocation2 + $0x60] sm:$0xff]  ;;  %v86_v63 = vld [vmem:[#allocation2 + $0x68] sm:$0xff] }
  0x28   :  { %v97_v0 = vld [vmem:[#allocation5 + $0x78] sm:$0xff]  ;;  %v104_v1 = vmul.f32 0.0, %v96_v58  ;;  %v338_v2 = vadd.f32 %v107_v53, %v82_v42  ;;  %v340_v3 = vadd.f32 %v108_v55, %v83_v49  ;;  %v110_v4 = vadd.f32 0.25, %v102_v56  ;;  %v87_v6 = vld [vmem:[#allocation2 + $0x70] sm:$0xff] }
  0x29   :  { %v111_v5 = vadd.f32 0.25, %v103_v57  ;;  %182 = vst.msk [vmem:[#allocation7 + $0x38] sm:$0xff] %vm130_vm0, %v79_v59  ;;  %v122_v7 = vmul.f32 %v336_v60, %v336_v60  ;;  %v345_v8 = vadd.f32 %v109_v61, %v84_v54  ;;  %v105_v9 = vmul.f32 0.0, %v97_v0  ;;  %v88_v15 = vld [vmem:[#allocation2 + $0x78] sm:$0xff] }
  0x2a   :  { %v112_v10 = vadd.f32 0.25, %v104_v1  ;;  %v123_v11 = vmul.f32 %v338_v2, %v338_v2  ;;  %v124_v12 = vmul.f32 %v340_v3, %v340_v3  ;;  %v351_v13 = vadd.f32 %v110_v4, %v85_v62 }
  0x2b   :  { %v353_v14 = vadd.f32 %v111_v5, %v86_v63  ;;  %v131_v16 = vsel %vm130_vm0, %v122_v7, 0.0  ;;  %v125_v17 = vmul.f32 %v345_v8, %v345_v8  ;;  %v113_v18 = vadd.f32 0.25, %v105_v9 }
  0x2c   :  { %v358_v19 = vadd.f32 %v112_v10, %v87_v6  ;;  %v132_v20 = vsel %vm130_vm0, %v123_v11, 0.0  ;;  %v140_v21 = vsel %vm130_vm0, %v124_v12, 0.0  ;;  %v126_v22 = vmul.f32 %v351_v13, %v351_v13 }
  0x2d   :  { %v127_v23 = vmul.f32 %v353_v14, %v353_v14  ;;  %v133_v24 = vadd.f32 %v132_v20, %v131_v16  ;;  %v141_v25 = vsel %vm130_vm0, %v125_v17, 0.0  ;;  %v121_v26 = vadd.f32 %v113_v18, %v88_v15 }
  0x2e   :  { %v128_v27 = vmul.f32 %v358_v19, %v358_v19  ;;  %v142_v28 = vadd.f32 %v141_v25, %v140_v21  ;;  %v149_v29 = vsel %vm130_vm0, %v126_v22, 0.0 }
  0x2f   :  { %v150_v30 = vsel %vm130_vm0, %v127_v23, 0.0  ;;  %v134_v31 = vrot.slane %v133_v24, 4  ;;  %v129_v33 = vmul.f32 %v121_v26, %v121_v26 }
  0x30   :  { %v151_v32 = vadd.f32 %v150_v30, %v149_v29  ;;  %v158_v34 = vsel %vm130_vm0, %v128_v27, 0.0  ;;  %v143_v35 = vrot.slane %v142_v28, 4 }
  0x31   :  { %v135_v36 = vadd.f32 %v134_v31, %v133_v24  ;;  %v159_v38 = vsel %vm130_vm0, %v129_v33, 0.0 }
  0x32   :  { %v152_v37 = vrot.slane %v151_v32, 4  ;;  %v144_v39 = vadd.f32 %v143_v35, %v142_v28  ;;  %v160_v40 = vadd.f32 %v159_v38, %v158_v34 }
  0x33   :  { %v136_v41 = vrot.slane %v135_v36, 2 }
  0x34   :  { %v153_v42 = vadd.f32 %v152_v37, %v151_v32  ;;  %v145_v43 = vrot.slane %v144_v39, 2  ;;  %v161_v44 = vrot.slane %v160_v40, 4 }
  0x35   :  { %v137_v45 = vadd.f32 %v136_v41, %v135_v36 }
  0x36   :  { %v154_v46 = vrot.slane %v153_v42, 2  ;;  %v146_v47 = vadd.f32 %v145_v43, %v144_v39  ;;  %v162_v48 = vadd.f32 %v161_v44, %v160_v40 }
  0x37   :  { %v138_v49 = vrot.slane %v137_v45, 1 }
  0x38   :  { %v155_v50 = vadd.f32 %v154_v46, %v153_v42  ;;  %v147_v51 = vrot.slane %v146_v47, 1  ;;  %v163_v52 = vrot.slane %v162_v48, 2 }
  0x39   :  { %v139_v53 = vadd.f32 %v138_v49, %v137_v45 }
  0x3a   :  { %v156_v54 = vrot.slane %v155_v50, 1  ;;  %v148_v55 = vadd.f32 %v147_v51, %v146_v47  ;;  %v164_v56 = vadd.f32 %v163_v52, %v162_v48 }
  0x3b   :  { %v167_v57 = vmax.f32 %v139_v53, 1e-24 }
  0x3c   :  { %v157_v58 = vadd.f32 %v156_v54, %v155_v50  ;;  %v168_v59 = vmax.f32 %v148_v55, 1e-24  ;;  %v165_v61 = vrot.slane %v164_v56, 1 }
  0x3d   :  { %223 = vrsqrt.f32 %v167_v57 }
  0x3e   :  { %v169_v62 = vmax.f32 %v157_v58, 1e-24  ;;  %225 = vrsqrt.f32 %v168_v59  ;;  %v166_v63 = vadd.f32 %v165_v61, %v164_v56 }
  0x40   :  { %227 = vrsqrt.f32 %v169_v62  ;;  %v170_v0 = vmax.f32 %v166_v63, 1e-24 }
  0x42   :  { %229 = vrsqrt.f32 %v170_v0 }
  0x4a   :  { %v224_v1 = vpop.eup %223 }
  0x4b   :  { %v226_v4 = vpop.eup %225  ;;  %v183_v5 = vmul.f32 %v224_v1, %v336_v60  ;;  %v184_v6 = vmul.f32 %v224_v1, %v338_v2 }
  0x4c   :  { %v185_v9 = vmul.f32 %v226_v4, %v340_v3  ;;  %v186_v10 = vmul.f32 %v226_v4, %v345_v8 }
  0x4d   :  { %v228_v7 = vpop.eup %227  ;;  %192 = vst.msk [vmem:[#allocation7 + $0x40] sm:$0xff] %vm130_vm0, %v183_v5  ;;  %193 = vst.msk [vmem:[#allocation7 + $0x48] sm:$0xff] %vm130_vm0, %v184_v6 }
  0x4e   :  { %v187_v11 = vmul.f32 %v228_v7, %v351_v13  ;;  %v188_v12 = vmul.f32 %v228_v7, %v353_v14  ;;  %194 = vst.msk [vmem:[#allocation7 + $0x50] sm:$0xff] %vm130_vm0, %v185_v9  ;;  %195 = vst.msk [vmem:[#allocation7 + $0x58] sm:$0xff] %vm130_vm0, %v186_v10 }
  0x4f   :  { %v230_v60 = vpop.eup %229 }
  0x50   :  { %196 = vst.msk [vmem:[#allocation7 + $0x60] sm:$0xff] %vm130_vm0, %v187_v11  ;;  %197 = vst.msk [vmem:[#allocation7 + $0x68] sm:$0xff] %vm130_vm0, %v188_v12  ;;  %v189_v2 = vmul.f32 %v230_v60, %v358_v19  ;;  %v190_v3 = vmul.f32 %v230_v60, %v121_v26 }
  0x52   :  { %198 = vst.msk [vmem:[#allocation7 + $0x70] sm:$0xff] %vm130_vm0, %v189_v2  ;;  %199 = vst.msk [vmem:[#allocation7 + $0x78] sm:$0xff] %vm130_vm0, %v190_v3 }
  0x53   :  { %282 = shalt.err (!%p279_p0)
}
  0x54   :  { %211 = dma.vmem_to_hbm [thread:$0]  %s206_s1, 2048, %s396_s2, [#allocation4], %s298_s12, %s298_s12, %s299_s13  }
  0x55   :  { %295 = dma.done.wait [#allocation4], 2048  }
  0x56   :  { %296 = vsyncadd [#allocation4], 4294965248 }
  0x57   :  { %215 = vsyncpa [#allocation3], 1 }
  0x58   :  { %216 = vsyncpa [#allocation6], 1 }
  0x59   :  { %217 = vsyncpa [#allocation4], 1 }

</bundles_post_ra>
